<compile_context>
chip_gen: v7x
topology: tpu7x:2x2x1
jax: 0.10.0
libtpu: 0.0.40
codegen_flags: <defaults>
</compile_context>

<pallas_src>
import math
import functools

import jax
import jax.numpy as jnp
from jax import lax
from jax.experimental import pallas as pl
from jax.experimental.pallas import tpu as pltpu

D_MODEL = 32
MAX_LEN = 5000
DROPOUT_P = 0.1


def _i32(v):
    """Fold a 32-bit unsigned constant into signed-int32 range (two's complement)."""
    v &= 0xFFFFFFFF
    return v - (1 << 32) if v >= (1 << 31) else v


def make_pe_table(d_model: int, max_len: int) -> jnp.ndarray:
    """Deterministic positional-encoding table, matching the PyTorch __init__."""
    position = jnp.arange(max_len, dtype=jnp.float32)[:, None]               # (L, 1)
    div_term = jnp.exp(
        jnp.arange(0, d_model, 2, dtype=jnp.float32) * (-math.log(10000.0) / d_model)
    )                                                                         # (D/2,)
    angles = position * div_term                                              # (L, D/2)
    pe = jnp.zeros((max_len, d_model), dtype=jnp.float32)
    pe = pe.at[:, 0::2].set(jnp.sin(angles))
    pe = pe.at[:, 1::2].set(jnp.cos(angles))
    return pe  # (max_len, d_model) == the (max_len, 1, d_model) buffer squeezed


def _pos_enc_kernel(seed_ref, x_ref, pe_ref, o_ref, *,
                    dropout_p, training, block_rows, batch):
    # seed_ref: (1,) int32, scalar-prefetched into SMEM
    # x_ref:    (block_rows, B*D) VMEM tile (lane-dense)
    # pe_ref:   (S_pad, D) VMEM, resident across the whole grid
    # o_ref:    (block_rows, B*D) VMEM tile
    i = pl.program_id(0)
    row0 = i * block_rows

    pe_rows = pe_ref[pl.ds(row0, block_rows), :]          # (TS, D)
    # x row layout is [b0:d0..d(D-1), b1:d0..d(D-1), ...] -> repeat pe along lanes.
    pe_wide = jnp.tile(pe_rows, (1, batch))               # (TS, B*D)

    y = x_ref[...] + pe_wide

    if training and dropout_p > 0.0:
        # Inverted dropout with a counter-based hash PRNG (portable: plain
        # int32 VPU ops only). Keyed by global element index -> independent
        # masks across grid tiles / TensorCores.
        seed = seed_ref[0]
        rows = lax.broadcasted_iota(jnp.int32, y.shape, 0) + row0
        cols = lax.broadcasted_iota(jnp.int32, y.shape, 1)
        h = rows * y.shape[1] + cols
        h = h ^ (seed * _i32(0x9E3779B1))
        # murmur3 fmix32
        h = h ^ lax.shift_right_logical(h, 16)
        h = h * _i32(0x85EBCA6B)
        h = h ^ lax.shift_right_logical(h, 13)
        h = h * _i32(0xC2B2AE35)
        h = h ^ lax.shift_right_logical(h, 16)
        u24 = lax.shift_right_logical(h, 8)               # uniform over [0, 2^24)
        threshold = int(round(dropout_p * (1 << 24)))     # keep prob ~= 1 - p
        keep = u24 >= threshold
        y = jnp.where(keep, y * (1.0 / (1.0 - dropout_p)), jnp.zeros_like(y))

    o_ref[...] = y


def positional_encoding(x, pe, seed, *, dropout_p=DROPOUT_P, training=False):
    """x: (S, B, D) float32; pe: (max_len, D) float32; seed: (1,) int32."""
    S, B, D = x.shape
    width = B * D
    x2 = x.reshape(S, width)  # row-major contiguous -> free, lane-dense layout

    # Tile the sequence axis; one x tile <= ~2 MiB so in+out double buffering
    # stays well under the smallest default scoped VMEM (v5e 16 MiB, v7x 32 MiB).
    block_rows = min(512, max(8, (2 * 1024 * 1024) // (width * 4)))
    block_rows = max(8, (block_rows // 8) * 8)
    if block_rows >= S:
        block_rows = S
        s_pad = S
    else:
        s_pad = pl.cdiv(S, block_rows) * block_rows
    n_blocks = s_pad // block_rows

    if s_pad != S:
        x2 = jnp.pad(x2, ((0, s_pad - S), (0, 0)))
    pe_slice = pe[: min(S, pe.shape[0])]
    if pe_slice.shape[0] < s_pad:
        pe_slice = jnp.pad(pe_slice, ((0, s_pad - pe_slice.shape[0]), (0, 0)))

    kernel = functools.partial(
        _pos_enc_kernel,
        dropout_p=dropout_p, training=training,
        block_rows=block_rows, batch=B,
    )

    out2 = pl.pallas_call(
        kernel,
        out_shape=jax.ShapeDtypeStruct((s_pad, width), x.dtype),
        grid_spec=pltpu.PrefetchScalarGridSpec(
            num_scalar_prefetch=1,                       # dropout seed in SMEM
            grid=(n_blocks,),
            in_specs=[
                # x: streamed, double-buffered tiles over the sequence axis
                pl.BlockSpec((block_rows, width), lambda i, _: (i, 0)),
                # pe: whole (padded) table DMA'd once, resident across the grid
                pl.BlockSpec((s_pad, D), lambda i, _: (0, 0)),
            ],
            out_specs=pl.BlockSpec((block_rows, width), lambda i, _: (i, 0)),
        ),
        compiler_params=pltpu.CompilerParams(
            dimension_semantics=("parallel",),           # shard tiles across TCs (v7x)
        ),
    )(seed, x2, pe_slice)

    return out2[:S].reshape(S, B, D)


if __name__ == "__main__":
    S, B, D = 8, 2, D_MODEL  # small demo shapes: seq=8, batch=2, d_model=32

    key = jax.random.PRNGKey(0)
    x = jax.random.normal(key, (S, B, D), dtype=jnp.float32)
    pe = make_pe_table(D, MAX_LEN)
    seed = jnp.array([0], dtype=jnp.int32)

    # Eval-mode forward (dropout is identity): exact semantics of x + pe[:S].
    out_eval = jax.block_until_ready(positional_encoding(x, pe, seed, training=False))
    ref = x + pe[:S][:, None, :]
    assert out_eval.shape == (S, B, D)
    assert jnp.allclose(out_eval, ref, atol=1e-6, rtol=1e-6), "eval-mode mismatch"

    # Training-mode forward: inverted dropout(p=0.1). Every element must be
    # either 0 (dropped) or ref/(1-p) (kept, rescaled).
    # TODO(synk): PyTorch's dropout RNG stream cannot be reproduced bit-exactly;
    # the mask comes from a deterministic in-kernel counter hash.
    out_train = jax.block_until_ready(positional_encoding(x, pe, seed, training=True))
    scaled = ref * (1.0 / (1.0 - DROPOUT_P))
    ok = jnp.isclose(out_train, 0.0, atol=1e-6) | jnp.isclose(
        out_train, scaled, rtol=1e-5, atol=1e-6)
    assert bool(jnp.all(ok)), "training-mode dropout structure mismatch"
    dropped = (out_train == 0.0) & (jnp.abs(scaled) > 1e-4)
    n_drop = int(dropped.sum())
    assert 0 < n_drop < out_train.size, "dropout mask degenerate"

    print("KERNEL_OK")
</pallas_src>

<mosaic_0001>
module attributes {stable_mosaic.version = 11 : i64} {
  func.func @_pos_enc_kernel(%arg0: i32, %arg1: memref<1xi32, #tpu.memory_space<smem>>, %arg2: memref<8x64xf32, #tpu.memory_space<vmem>>, %arg3: memref<8x32xf32, #tpu.memory_space<vmem>>, %arg4: memref<8x64xf32, #tpu.memory_space<vmem>>) attributes {dimension_semantics = [#tpu.dimension_semantics<parallel>], iteration_bounds = array<i64: 1>, scalar_prefetch = 1 : i64, scratch_operands = 0 : i64, tpu.core_type = #tpu.core_type<tc>, window_params = [{transform_indices = @transform_0, window_bounds = array<i64: 8, 64>}, {pipeline_mode = #tpu.pipeline_mode<synchronous>, transform_indices = @transform_1, window_bounds = array<i64: 8, 32>}, {transform_indices = @transform_2, window_bounds = array<i64: 8, 64>}]} {
    %c8_i32 = arith.constant 8 : i32
    %0 = arith.muli %arg0, %c8_i32 : i32
    %1 = arith.index_cast %0 : i32 to index
    %c0 = arith.constant 0 : index
    %2 = vector.load %arg3[%1, %c0] : memref<8x32xf32, #tpu.memory_space<vmem>>, vector<8x32xf32>
    %3 = tpu.concatenate %2, %2 in 1 : vector<8x32xf32>, vector<8x32xf32> -> vector<8x64xf32>
    %c0_0 = arith.constant 0 : index
    %c0_1 = arith.constant 0 : index
    %4 = vector.load %arg2[%c0_0, %c0_1] : memref<8x64xf32, #tpu.memory_space<vmem>>, vector<8x64xf32>
    %5 = arith.addf %4, %3 : vector<8x64xf32>
    %c0_2 = arith.constant 0 : index
    %c0_3 = arith.constant 0 : index
    %6 = vector.load %arg4[%c0_2, %c0_3] : memref<8x64xf32, #tpu.memory_space<vmem>>, vector<8x64xf32>
    tpu.vector_store %arg4[%c0_2, %c0_3], %5 {strides = array<i32>} : memref<8x64xf32, #tpu.memory_space<vmem>>, vector<8x64xf32>,
    return
  }
  func.func @transform_0(%arg0: i32, %arg1: memref<1xi32, #tpu.memory_space<smem>>) -> (i32, i32) {
    %c0_i32 = arith.constant 0 : i32
    %c0_i32_0 = arith.constant 0 : i32
    return %arg0, %c0_i32 : i32, i32
  }
  func.func @transform_1(%arg0: i32, %arg1: memref<1xi32, #tpu.memory_space<smem>>) -> (i32, i32) {
    %c0_i32 = arith.constant 0 : i32
    %c0_i32_0 = arith.constant 0 : i32
    %c0_i32_1 = arith.constant 0 : i32
    return %c0_i32, %c0_i32_0 : i32, i32
  }
  func.func @transform_2(%arg0: i32, %arg1: memref<1xi32, #tpu.memory_space<smem>>) -> (i32, i32) {
    %c0_i32 = arith.constant 0 : i32
    %c0_i32_0 = arith.constant 0 : i32
    return %arg0, %c0_i32 : i32, i32
  }
}

</mosaic_0001>

<bundles_post_ra>
// kernel: tpu_custom_call.1
= control target key start
LH: loop header
LB: loop body
LE: loop exit
PB: predicated region body
PF: predicated region fallthrough
CT: control target
= control target key end

     0   :  { %9 = vsyncpa [#allocation5], 0  ;;  %s203_s0 = inlined_call_operand.<no memory space> [shape: s32[1], index: 0, kind: input, shape index: {}]   ;;  %s204_s1 = inlined_call_operand.hbm [shape: f32[8,64], index: 1, kind: input, shape index: {}]   ;;  %s205_s2 = inlined_call_operand.hbm [shape: f32[8,32], index: 2, kind: input, shape index: {}]   ;;  %s206_s3 = inlined_call_operand.hbm [shape: f32[8,64], index: 3, kind: output, shape index: {}]  }
   0x1   :  { %10 = vsyncpa [#allocation8], 0 }
   0x2   :  { %11 = vsyncpa [#allocation6], 0  ;;  %s143_s12 = smov [#allocation4]   ;;  %s144_s14 = smov [#allocation7]  }
   0x3   :  { %s18_s13 = sshll.u32 %s143_s12, 4  ;;  %s28_s15 = sshll.u32 %s144_s14, 4  ;;  %s19_s13 = int_to_ptr.vmem [resolvable:$true] %s18_s13  ;;  %s29_s15 = int_to_ptr.vmem [resolvable:$true] %s28_s15 }
   0x4   :  { %s71_s17 = scalar_lea.hbm %s204_s1, 128 }
   0x5   :  { %p72_p0 = scmp.ne.s32.totalorder %s204_s1, %s71_s17  ;;  %p75_p1 = scmp.lt.u32.totalorder %s71_s17, %s204_s1 }
   0x7   :  { %p77_p2 = pnand %p75_p1, %p72_p0 }
   0x9   :  { %80 = shalt.err (!%p77_p2)
}
   0xa   :  { %s81_s22 = scalar_lea.vmem %s19_s13, 128  ;;  %p86_p4 = scmp.lt.s32.totalorder %s19_s13, %s19_s13 }
   0xb   :  { %p82_p3 = scmp.ne.s32.totalorder %s19_s13, %s81_s22  ;;  %p87_p5 = scmp.lt.s32.totalorder %s81_s22, %s81_s22 }
   0xd   :  { %p88_p6 = por %p87_p5, %p86_p4 }
   0xf   :  { %p89_p7 = pnand %p88_p6, %p82_p3 }
  0x11   :  { %92 = shalt.err (!%p89_p7)
}
  0x12   :  { %21 = dma.hbm_to_vmem [thread:$0]  %s204_s1, 128, %s19_s13, [#allocation5]  }
  0x13   :  { %s93_s27 = scalar_lea.hbm %s205_s2, 128 }
  0x14   :  { %p94_p8 = scmp.ne.s32.totalorder %s205_s2, %s93_s27  ;;  %p97_p9 = scmp.lt.u32.totalorder %s93_s27, %s205_s2 }
  0x16   :  { %p99_p10 = pnand %p97_p9, %p94_p8 }
  0x18   :  { %102 = shalt.err (!%p99_p10)
}
  0x19   :  { %s103_s5 = scalar_lea.vmem %s29_s15, 128  ;;  %p108_p12 = scmp.lt.s32.totalorder %s29_s15, %s29_s15 }
  0x1a   :  { %p104_p11 = scmp.ne.s32.totalorder %s29_s15, %s103_s5  ;;  %p109_p13 = scmp.lt.s32.totalorder %s103_s5, %s103_s5 }
  0x1c   :  { %p110_p0 = por %p109_p13, %p108_p12 }
  0x1e   :  { %p111_p1 = pnand %p110_p0, %p104_p11 }
  0x20   :  { %114 = shalt.err (!%p111_p1)
}
  0x21   :  { %31 = dma.hbm_to_vmem [thread:$0]  %s205_s2, 128, %s29_s15, [#allocation8]  }
  0x22   :  { %137 = dma.done.wait [#allocation5], 128  }
  0x23   :  { %138 = vsyncadd [#allocation5], 4294967168 }
  0x24   :  { %139 = dma.done.wait [#allocation8], 128  }
  0x25   :  { %140 = vsyncadd [#allocation8], 4294967168  ;;  %v40_v0 = vld [vmem:[#allocation7] sm:$0xff]  ;;  %s145_s7 = smov 32   ;;  %vm45_vm0 = vcmask 261120   ;;  %v47_v1 = vld [vmem:[#allocation4] sm:$0xff] }
  0x26   :  { %42 = vrot.lane.b32.xlu0 %v40_v0, %s145_s7  ;;  %s146_s8 = smov [#allocation9]   ;;  %vm49_vm1 = vcmask 523264  }
  0x27   :  { %s57_s9 = sshll.u32 %s146_s8, 4  ;;  %s58_s9 = int_to_ptr.vmem [resolvable:$true] %s57_s9 }
  0x28   :  { %s115_s10 = scalar_lea.vmem %s58_s9, 128  ;;  %p120_p3 = scmp.lt.s32.totalorder %s58_s9, %s58_s9 }
  0x29   :  { %p116_p2 = scmp.ne.s32.totalorder %s58_s9, %s115_s10  ;;  %p121_p4 = scmp.lt.s32.totalorder %s115_s10, %s115_s10 }
  0x2b   :  { %p122_p5 = por %p121_p4, %p120_p3 }
  0x2d   :  { %p123_p6 = pnand %p122_p5, %p116_p2 }
  0x98   :  { %v43_v2 = vpop.permute.xlu0 %42 }
  0x99   :  { %v46_v3 = vsel %vm45_vm0, %v40_v0, %v43_v2 }
  0x9a   :  { %v48_v4 = vadd.f32 %v47_v1, %v46_v3 }
  0x9c   :  { %50 = vst.msk [vmem:[#allocation9] sm:$0xff] %vm49_vm1, %v48_v4 }
  0x9d   :  { %126 = shalt.err (!%p123_p6)
}
  0x9e   :  { %s127_s12 = scalar_lea.hbm %s206_s3, 128 }
  0x9f   :  { %p128_p7 = scmp.ne.s32.totalorder %s206_s3, %s127_s12  ;;  %p131_p8 = scmp.lt.u32.totalorder %s127_s12, %s206_s3 }
  0xa1   :  { %p133_p9 = pnand %p131_p8, %p128_p7 }
  0xa3   :  { %136 = shalt.err (!%p133_p9)
}
  0xa4   :  { %60 = dma.vmem_to_hbm [thread:$0]  %s58_s9, 128, %s206_s3, [#allocation6]  }
  0xa5   :  { %141 = dma.done.wait [#allocation6], 128  }
  0xa6   :  { %142 = vsyncadd [#allocation6], 4294967168 }
  0xa7   :  { %64 = vsyncpa [#allocation5], 1 }
  0xa8   :  { %65 = vsyncpa [#allocation8], 1 }
  0xa9   :  { %66 = vsyncpa [#allocation6], 1 }

</bundles_post_ra>
